<compile_context>
chip_gen: v6e
topology: v6e:2x2x1
jax: 0.10.0
libtpu: 0.0.40
codegen_flags: <defaults>
</compile_context>

<pallas_src>
import functools

import jax
import jax.numpy as jnp
from jax.experimental import pallas as pl
from jax.experimental.pallas import tpu as pltpu


def _value_net_kernel(x_ref, w1_ref, b1_ref, w2_ref, b2_ref, out_ref, *,
                      use_mxu_fc1):
    """One batch tile: out = relu(x @ W1 + b1) @ W2 + b2 (fc2 done on VPU/XLU)."""
    x = x_ref[...]                                        # (TB, S) f32

    if use_mxu_fc1:
        # General path: MXU matmul with f32 accumulation.
        h = jnp.dot(x, w1_ref[...], preferred_element_type=jnp.float32)
    else:
        # Tiny-K path (e.g. CartPole S=4): K broadcast multiply-adds on the
        # VPU; avoids MXU fill/drain for a degenerate contraction.
        h = x[:, 0:1] * w1_ref[0:1, :]                    # (TB,1)*(1,H)->(TB,H)
        for s in range(1, x_ref.shape[1]):
            h = h + x[:, s:s + 1] * w1_ref[s:s + 1, :]

    h = jnp.maximum(h + b1_ref[...], 0.0)                 # bias + ReLU, f32 VPU

    # fc2: N=1, so do it as VPU mul + XLU lane reduction instead of an MXU
    # matmul that would use 1 of 128/256 output columns.
    v = jnp.sum(h * w2_ref[...], axis=-1, keepdims=True)  # (TB, 1)
    v = v + b2_ref[0, 0]                                  # scalar bias from SMEM
    out_ref[...] = v.astype(out_ref.dtype)


def value_net_forward(x, w1_t, b1, w2_row, b2, *, block_b=512):
    """x: (B, S); w1_t: (S, H); b1: (1, H); w2_row: (1, H); b2: (1, 1) -> (B, 1)."""
    B, S = x.shape
    H = w1_t.shape[1]

    # Batch tile: large enough to pipeline, multiple of 8 when tiling.
    tb = min(block_b, B)
    pad = (-B) % tb
    xp = jnp.pad(x, ((0, pad), (0, 0))) if pad else x
    Bp = B + pad

    use_mxu_fc1 = S > 8
    kernel = functools.partial(_value_net_kernel, use_mxu_fc1=use_mxu_fc1)

    bytes_accessed = 4 * (Bp * S + Bp + S * H + 2 * H + 1)
    out = pl.pallas_call(
        kernel,
        out_shape=jax.ShapeDtypeStruct((Bp, 1), jnp.float32),
        grid=(Bp // tb,),
        in_specs=[
            pl.BlockSpec((tb, S), lambda i: (i, 0)),     # x: streamed per tile
            pl.BlockSpec((S, H), lambda i: (0, 0)),      # W1: resident
            pl.BlockSpec((1, H), lambda i: (0, 0)),      # b1: resident
            pl.BlockSpec((1, H), lambda i: (0, 0)),      # W2 row: resident
            pl.BlockSpec(memory_space=pltpu.SMEM),       # b2 scalar in SMEM
        ],
        out_specs=pl.BlockSpec((tb, 1), lambda i: (i, 0)),
        compiler_params=pltpu.CompilerParams(
            dimension_semantics=("parallel",)),          # megacore on v7x
        cost_estimate=pl.CostEstimate(
            flops=2 * Bp * (S * H + H),
            transcendentals=0,
            bytes_accessed=bytes_accessed),
    )(xp, w1_t, b1, w2_row, b2)

    return out[:B] if pad else out


def init_params(key, state_dim, hidden_dim):
    """Deterministic init mirroring torch.nn.Linear default U(-1/sqrt(fan_in), +)."""
    k1, k2, k3, k4 = jax.random.split(key, 4)
    bound1 = 1.0 / jnp.sqrt(state_dim)
    bound2 = 1.0 / jnp.sqrt(hidden_dim)
    # fc1 weight stored transposed: (in, out); fc2 weight in torch layout (1, H).
    w1_t = jax.random.uniform(k1, (state_dim, hidden_dim), jnp.float32,
                              minval=-bound1, maxval=bound1)
    b1 = jax.random.uniform(k2, (1, hidden_dim), jnp.float32,
                            minval=-bound1, maxval=bound1)
    w2_row = jax.random.uniform(k3, (1, hidden_dim), jnp.float32,
                                minval=-bound2, maxval=bound2)
    b2 = jax.random.uniform(k4, (1, 1), jnp.float32,
                            minval=-bound2, maxval=bound2)
    return w1_t, b1, w2_row, b2


def _reference(x, w1_t, b1, w2_row, b2):
    return jnp.maximum(x @ w1_t + b1, 0.0) @ w2_row.T + b2


if __name__ == "__main__":
    state_dim = 4      # CartPole-v1 observation dim
    hidden_dim = 128

    key = jax.random.PRNGKey(0)
    kx, kp, kx2 = jax.random.split(key, 3)
    w1_t, b1, w2_row, b2 = init_params(kp, state_dim, hidden_dim)

    # Small single-block case (batch=8).
    x = jax.random.normal(kx, (8, state_dim), jnp.float32)
    out = jax.block_until_ready(value_net_forward(x, w1_t, b1, w2_row, b2))
    ref = _reference(x, w1_t, b1, w2_row, b2)
    assert out.shape == (8, 1)
    assert jnp.allclose(out, ref, atol=1e-5, rtol=1e-5)

    # Multi-block case exercising the batch grid + padding path
    # (batch=20, block=8 -> grid of 3 with 4 padded rows sliced off).
    x2 = jax.random.normal(kx2, (20, state_dim), jnp.float32)
    out2 = jax.block_until_ready(
        value_net_forward(x2, w1_t, b1, w2_row, b2, block_b=8))
    ref2 = _reference(x2, w1_t, b1, w2_row, b2)
    assert out2.shape == (20, 1)
    assert jnp.allclose(out2, ref2, atol=1e-5, rtol=1e-5)

    print("KERNEL_OK")
</pallas_src>

<mosaic_0001>
module attributes {stable_mosaic.version = 11 : i64} {
  func.func @_value_net_kernel(%arg0: i32, %arg1: memref<8x4xf32, #tpu.memory_space<vmem>>, %arg2: memref<4x128xf32, #tpu.memory_space<vmem>>, %arg3: memref<1x128xf32, #tpu.memory_space<vmem>>, %arg4: memref<1x128xf32, #tpu.memory_space<vmem>>, %arg5: memref<1x1xf32, #tpu.memory_space<smem>>, %arg6: memref<8x1xf32, #tpu.memory_space<vmem>>) attributes {dimension_semantics = [#tpu.dimension_semantics<parallel>], iteration_bounds = array<i64: 1>, scalar_prefetch = 0 : i64, scratch_operands = 0 : i64, tpu.core_type = #tpu.core_type<tc>, window_params = [{transform_indices = @transform_0, window_bounds = array<i64: 8, 4>}, {pipeline_mode = #tpu.pipeline_mode<synchronous>, transform_indices = @transform_1, window_bounds = array<i64: 4, 128>}, {pipeline_mode = #tpu.pipeline_mode<synchronous>, transform_indices = @transform_2, window_bounds = array<i64: 1, 128>}, {pipeline_mode = #tpu.pipeline_mode<synchronous>, transform_indices = @transform_3, window_bounds = array<i64: 1, 128>}, {transform_indices = @transform_4, window_bounds = array<i64: 1, 1>}, {transform_indices = @transform_5, window_bounds = array<i64: 8, 1>}]} {
    %c0 = arith.constant 0 : index
    %c0_0 = arith.constant 0 : index
    %0 = vector.load %arg1[%c0, %c0_0] : memref<8x4xf32, #tpu.memory_space<vmem>>, vector<8x4xf32>
    %1 = vector.extract_strided_slice %0 {offsets = [0, 0], sizes = [8, 1], strides = [1, 1]} : vector<8x4xf32> to vector<8x1xf32>
    %c0_1 = arith.constant 0 : index
    %c0_2 = arith.constant 0 : index
    %2 = vector.load %arg2[%c0_1, %c0_2] : memref<4x128xf32, #tpu.memory_space<vmem>>, vector<1x128xf32>
    %3 = vector.broadcast %1 : vector<8x1xf32> to vector<8x128xf32>
    %4 = vector.broadcast %2 : vector<1x128xf32> to vector<8x128xf32>
    %5 = arith.mulf %3, %4 : vector<8x128xf32>
    %6 = vector.extract_strided_slice %0 {offsets = [0, 1], sizes = [8, 1], strides = [1, 1]} : vector<8x4xf32> to vector<8x1xf32>
    %c1 = arith.constant 1 : index
    %c0_3 = arith.constant 0 : index
    %7 = vector.load %arg2[%c1, %c0_3] : memref<4x128xf32, #tpu.memory_space<vmem>>, vector<1x128xf32>
    %8 = vector.broadcast %6 : vector<8x1xf32> to vector<8x128xf32>
    %9 = vector.broadcast %7 : vector<1x128xf32> to vector<8x128xf32>
    %10 = arith.mulf %8, %9 : vector<8x128xf32>
    %11 = arith.addf %5, %10 : vector<8x128xf32>
    %12 = vector.extract_strided_slice %0 {offsets = [0, 2], sizes = [8, 1], strides = [1, 1]} : vector<8x4xf32> to vector<8x1xf32>
    %c2 = arith.constant 2 : index
    %c0_4 = arith.constant 0 : index
    %13 = vector.load %arg2[%c2, %c0_4] : memref<4x128xf32, #tpu.memory_space<vmem>>, vector<1x128xf32>
    %14 = vector.broadcast %12 : vector<8x1xf32> to vector<8x128xf32>
    %15 = vector.broadcast %13 : vector<1x128xf32> to vector<8x128xf32>
    %16 = arith.mulf %14, %15 : vector<8x128xf32>
    %17 = arith.addf %11, %16 : vector<8x128xf32>
    %18 = vector.extract_strided_slice %0 {offsets = [0, 3], sizes = [8, 1], strides = [1, 1]} : vector<8x4xf32> to vector<8x1xf32>
    %c3 = arith.constant 3 : index
    %c0_5 = arith.constant 0 : index
    %19 = vector.load %arg2[%c3, %c0_5] : memref<4x128xf32, #tpu.memory_space<vmem>>, vector<1x128xf32>
    %20 = vector.broadcast %18 : vector<8x1xf32> to vector<8x128xf32>
    %21 = vector.broadcast %19 : vector<1x128xf32> to vector<8x128xf32>
    %22 = arith.mulf %20, %21 : vector<8x128xf32>
    %23 = arith.addf %17, %22 : vector<8x128xf32>
    %c0_6 = arith.constant 0 : index
    %c0_7 = arith.constant 0 : index
    %24 = vector.load %arg3[%c0_6, %c0_7] : memref<1x128xf32, #tpu.memory_space<vmem>>, vector<1x128xf32>
    %25 = vector.broadcast %24 : vector<1x128xf32> to vector<8x128xf32>
    %26 = arith.addf %23, %25 : vector<8x128xf32>
    %cst = arith.constant 0.000000e+00 : f32
    %27 = vector.broadcast %cst : f32 to vector<8x128xf32>
    %28 = arith.maximumf %26, %27 : vector<8x128xf32>
    %c0_8 = arith.constant 0 : index
    %c0_9 = arith.constant 0 : index
    %29 = vector.load %arg4[%c0_8, %c0_9] : memref<1x128xf32, #tpu.memory_space<vmem>>, vector<1x128xf32>
    %30 = vector.broadcast %29 : vector<1x128xf32> to vector<8x128xf32>
    %31 = arith.mulf %28, %30 : vector<8x128xf32>
    %cst_10 = arith.constant dense<0.000000e+00> : vector<8xf32>
    %32 = vector.multi_reduction <add>, %31, %cst_10 [1] : vector<8x128xf32> to vector<8xf32>
    %33 = vector.shape_cast %32 : vector<8xf32> to vector<8x1xf32>
    %c0_11 = arith.constant 0 : index
    %c0_12 = arith.constant 0 : index
    %34 = memref.load %arg5[%c0_11, %c0_12] : memref<1x1xf32, #tpu.memory_space<smem>>
    %35 = vector.broadcast %34 : f32 to vector<8x1xf32>
    %36 = arith.addf %33, %35 : vector<8x1xf32>
    %c0_13 = arith.constant 0 : index
    %c0_14 = arith.constant 0 : index
    %37 = vector.load %arg6[%c0_13, %c0_14] : memref<8x1xf32, #tpu.memory_space<vmem>>, vector<8x1xf32>
    tpu.vector_store %arg6[%c0_13, %c0_14], %36 {strides = array<i32>} : memref<8x1xf32, #tpu.memory_space<vmem>>, vector<8x1xf32>,
    return
  }
  func.func @transform_0(%arg0: i32) -> (i32, i32) {
    %c0_i32 = arith.constant 0 : i32
    %c0_i32_0 = arith.constant 0 : i32
    return %arg0, %c0_i32 : i32, i32
  }
  func.func @transform_1(%arg0: i32) -> (i32, i32) {
    %c0_i32 = arith.constant 0 : i32
    %c0_i32_0 = arith.constant 0 : i32
    %c0_i32_1 = arith.constant 0 : i32
    return %c0_i32, %c0_i32_0 : i32, i32
  }
  func.func @transform_2(%arg0: i32) -> (i32, i32) {
    %c0_i32 = arith.constant 0 : i32
    %c0_i32_0 = arith.constant 0 : i32
    %c0_i32_1 = arith.constant 0 : i32
    return %c0_i32, %c0_i32_0 : i32, i32
  }
  func.func @transform_3(%arg0: i32) -> (i32, i32) {
    %c0_i32 = arith.constant 0 : i32
    %c0_i32_0 = arith.constant 0 : i32
    %c0_i32_1 = arith.constant 0 : i32
    return %c0_i32, %c0_i32_0 : i32, i32
  }
  func.func @transform_4(%arg0: i32) -> (i32, i32) {
    %c0_i32 = arith.constant 0 : i32
    %c0_i32_0 = arith.constant 0 : i32
    %c0_i32_1 = arith.constant 0 : i32
    return %c0_i32, %c0_i32_0 : i32, i32
  }
  func.func @transform_5(%arg0: i32) -> (i32, i32) {
    %c0_i32 = arith.constant 0 : i32
    %c0_i32_0 = arith.constant 0 : i32
    return %arg0, %c0_i32 : i32, i32
  }
}

</mosaic_0001>

<bundles_post_ra>
// kernel: tpu_custom_call.1
= control target key start
LH: loop header
LB: loop body
LE: loop exit
PB: predicated region body
PF: predicated region fallthrough
CT: control target
= control target key end

     0   :  { %v109_v0 = vmov 0   ;;  %v110_v2 = vmov 2   ;;  %v111_v3 = vmov 1   ;;  %v112_v4 = vmov 3   ;;  %s170_s0 = inlined_call_operand.vmem [shape: f32[8,4], index: 0, kind: input, shape index: {}]   ;;  %s171_s1 = inlined_call_operand.vmem [shape: f32[4,128], index: 1, kind: input, shape index: {}]   ;;  %s172_s2 = inlined_call_operand.vmem [shape: f32[1,128], index: 2, kind: input, shape index: {}]   ;;  %s173_s3 = inlined_call_operand.vmem [shape: f32[1,128], index: 3, kind: input, shape index: {}]   ;;  %s174_s4 = inlined_call_operand.<no memory space> [shape: f32[1,1], index: 4, kind: input, shape index: {}]   ;;  %s175_s5 = inlined_call_operand.vmem [shape: f32[8,1], index: 5, kind: output, shape index: {}]  }
   0x1   :  { %104 = vset.pattern.permute.xlu0 %v109_v0  ;;  %v21_v1 = vld [vmem:[%s170_s0] sm:$0xff]  ;;  %106 = vset.pattern.permute.xlu1 %v110_v2  ;;  %v86_v25 = vstv %s174_s4  ;;  %vm88_vm0 = vcmask 7168  }
   0x2   :  { %25 = vperm.xlu0 %104, %v21_v1   ;;  %46 = vperm.xlu1 %106, %v21_v1   ;;  %v94_v7 = vld [vmem:[%s171_s1] ss:$0 sm:$0xff]  ;;  %v95_v8 = vld [vmem:[%s171_s1 + $0x1] ss:$0 sm:$0xff]  ;;  %v96_v9 = vld [vmem:[%s171_s1 + $0x2] ss:$0 sm:$0xff] }
   0x3   :  { %v97_v11 = vld [vmem:[%s171_s1 + $0x3] ss:$0 sm:$0xff]  ;;  %v98_v19 = vld [vmem:[%s172_s2] ss:$0 sm:$0xff] }
   0x4   :  { %v99_v22 = vld [vmem:[%s173_s3] ss:$0 sm:$0xff] }
   0x6   :  { %105 = vset.pattern.permute.xlu0 %v111_v3  ;;  %107 = vset.pattern.permute.xlu1 %v112_v4 }
   0x7   :  { %35 = vperm.xlu0 %105, %v21_v1   ;;  %57 = vperm.xlu1 %107, %v21_v1  }
   0xb   :  { %108 = vset.pattern.permute.xlu0 %v112_v4 }
  0x7d   :  { %v26_v5 = vpop.permute.xlu0 %25  ;;  %v47_v6 = vpop.permute.xlu1 %46 }
  0x7e   :  { %v32_v13 = vmul.f32 %v94_v7, %v26_v5  ;;  %v53_v15 = vmul.f32 %v96_v9, %v47_v6 }
  0x82   :  { %v36_v10 = vpop.permute.xlu0 %35  ;;  %v58_v12 = vpop.permute.xlu1 %57 }
  0x83   :  { %v42_v14 = vmul.f32 %v95_v8, %v36_v10  ;;  %v64_v17 = vmul.f32 %v97_v11, %v58_v12 }
  0x85   :  { %v43_v16 = vadd.f32 %v42_v14, %v32_v13 }
  0x87   :  { %v54_v18 = vadd.f32 %v53_v15, %v43_v16 }
  0x89   :  { %v65_v20 = vadd.f32 %v64_v17, %v54_v18 }
  0x8b   :  { %v73_v21 = vadd.f32 %v98_v19, %v65_v20 }
  0x8d   :  { %v74_v23 = vmax.f32 %v73_v21, 0.0 }
  0x8f   :  { %v82_v24 = vmul.f32 %v99_v22, %v74_v23 }
  0x91   :  { %83 = vadd.xlane.f32.xlu1 %v82_v24 }
 0x11a   :  { %v84_v26 = vpop.xlane.xlu1 %83 }
 0x11b   :  { %v87_v27 = vadd.f32 %v86_v25, %v84_v26 }
 0x11d   :  { %89 = vst.msk [vmem:[%s175_s5] sm:$0xff] %vm88_vm0, %v87_v27 }

</bundles_post_ra>
